<compile_context>
chip_gen: v5e
topology: v5e:2x2
jax: 0.10.0
libtpu: 0.0.40
codegen_flags: <defaults>
</compile_context>

<pallas_src>
import functools
import math

import jax
import jax.numpy as jnp
from jax.experimental import pallas as pl
from jax.experimental.pallas import tpu as pltpu


def _output_head_kernel(x_ref, w_ref, b_ref, score_ref, geo_ref, *, scope):
    # x_ref: (1, 32, TS) bf16 ; w_ref: (6, 32) bf16 ; b_ref: (6, 1) f32
    # score_ref: (1, 1, TS) f32 ; geo_ref: (1, 5, TS) f32
    # Fused row order: rows 0..3 = loc, row 4 = angle, row 5 = score.
    x = x_ref[0]                                                   # (32, TS)
    w = w_ref[...]                                                 # (6, 32)
    y = jnp.dot(w, x, preferred_element_type=jnp.float32) + b_ref[...]  # (6, TS)
    s = jax.nn.sigmoid(y)                                          # EUP path

    # Per-slab affine with trace-time scalar constants (no (6,1) broadcasts).
    geo_ref[0, 0:4, :] = (s[0:4, :] * scope).astype(geo_ref.dtype)
    geo_ref[0, 4:5, :] = ((s[4:5, :] - 0.5) * math.pi).astype(geo_ref.dtype)
    score_ref[0] = s[5:6, :].astype(score_ref.dtype)


def _pick_max_ts():
    """Generation-aware spatial tile upper bound.

    32K keeps double-buffered VMEM (~6 MiB) under every generation's default
    scoped-VMEM limit (incl. v5e's 16 MiB).  On v7x-class chips (<=64 MiB VMEM,
    ~3.2 TB/s HBM) we use 64K (~11.5 MiB) to cut per-step pipeline overhead.
    """
    try:
        info = pltpu.get_tpu_info()
        vmem = getattr(info, "vmem_capacity_bytes", None)
        if vmem is not None and vmem <= 64 * 1024 * 1024:
            return 65536
    except Exception:
        pass
    return 32768


def _fused_head(x3, w, b, *, scope, max_ts=None):
    """x3: (N, 32, HW) bf16.  Returns (score (N,1,HW) f32, geo (N,5,HW) f32)."""
    n, cin, hw = x3.shape
    cout = w.shape[0]
    assert cout == 6 and cin == 32
    if max_ts is None:
        max_ts = _pick_max_ts()

    # Spatial tile: full extent if small, else a lane-dense multiple of 128.
    ts = hw if hw <= max_ts else max_ts
    # Megacore (v7x): guarantee >= 2 "parallel" grid points so both
    # TensorCores stream HBM; otherwise half the bandwidth idles for N=1.
    if n * pl.cdiv(hw, ts) < 2:
        half = (((hw + 1) // 2) // 128) * 128
        if half >= 128:
            ts = half

    grid = (n, pl.cdiv(hw, ts))
    kernel = functools.partial(_output_head_kernel, scope=scope)

    return pl.pallas_call(
        kernel,
        out_shape=(
            jax.ShapeDtypeStruct((n, 1, hw), jnp.float32),
            jax.ShapeDtypeStruct((n, 5, hw), jnp.float32),
        ),
        grid_spec=pltpu.PrefetchScalarGridSpec(
            num_scalar_prefetch=0,
            grid=grid,
            in_specs=[
                pl.BlockSpec((1, cin, ts), lambda bi, si: (bi, 0, si)),
                pl.BlockSpec((cout, cin), lambda bi, si: (0, 0)),
                pl.BlockSpec((cout, 1), lambda bi, si: (0, 0)),
            ],
            out_specs=[
                pl.BlockSpec((1, 1, ts), lambda bi, si: (bi, 0, si)),
                pl.BlockSpec((1, 5, ts), lambda bi, si: (bi, 0, si)),
            ],
        ),
        compiler_params=pltpu.CompilerParams(
            dimension_semantics=("parallel", "parallel")),
    )(x3, w, b)


class OutputPallas:
    """JAX/Pallas equivalent of the PyTorch `Output` module."""

    def __init__(self, scope=512, key=jax.random.PRNGKey(0)):
        self.scope = float(scope)
        k1, k2, k3 = jax.random.split(key, 3)
        cin = 32
        # kaiming_normal_(mode='fan_out', nonlinearity='relu') for a 1x1 conv:
        # std = sqrt(2 / (out_channels * 1 * 1)); bias = 0.
        w_score = jax.random.normal(k1, (1, cin), jnp.float32) * math.sqrt(2.0 / 1)
        w_loc = jax.random.normal(k2, (4, cin), jnp.float32) * math.sqrt(2.0 / 4)
        w_angle = jax.random.normal(k3, (1, cin), jnp.float32) * math.sqrt(2.0 / 1)
        # Fused (6, 32) channel-mixing matrix, row order [loc(4), angle(1), score(1)]
        # so geo occupies sublanes 0..4 of the kernel's output tile.
        self.w = jnp.concatenate([w_loc, w_angle, w_score], axis=0)   # (6, 32)
        self.b = jnp.zeros((6, 1), jnp.float32)                       # learned bias (zero-init)

    def __call__(self, x):
        # x: NCHW (N, 32, H, W) -- stays NCHW, only a free reshape.
        n, c, h, w = x.shape
        assert c == 32
        # One upstream cast to bf16: halves HBM read traffic of the mem-bound
        # kernel; the matmul still accumulates in f32 on the MXU.
        x3 = x.reshape(n, c, h * w).astype(jnp.bfloat16)
        score3, geo3 = _fused_head(
            x3, self.w.astype(jnp.bfloat16), self.b, scope=self.scope)
        score = score3.reshape(n, 1, h, w)
        geo = geo3.reshape(n, 5, h, w)
        return [score, geo]


def _reference(x, mod: OutputPallas):
    # Pure-JAX reference using the same bf16 inputs / f32 accumulation, so the
    # comparison validates the kernel math itself.
    xb = x.astype(jnp.bfloat16)
    wb = mod.w.astype(jnp.bfloat16)
    y = jnp.einsum("oc,nchw->nohw", wb, xb,
                   preferred_element_type=jnp.float32) + mod.b.reshape(1, 6, 1, 1)
    s = jax.nn.sigmoid(y)
    loc = s[:, 0:4] * mod.scope
    angle = (s[:, 4:5] - 0.5) * math.pi
    score = s[:, 5:6]
    geo = jnp.concatenate([loc, angle], axis=1)
    return score, geo


if __name__ == "__main__":
    key = jax.random.PRNGKey(0)
    k_x, k_p = jax.random.split(key)
    # Small shapes consistent with the module: N=2, C_in=32, H=W=16.
    x = jax.random.normal(k_x, (2, 32, 16, 16), jnp.float32)

    mod = OutputPallas(scope=512, key=k_p)
    score, geo = mod(x)
    jax.block_until_ready(score)
    jax.block_until_ready(geo)

    ref_score, ref_geo = _reference(x, mod)
    assert score.shape == (2, 1, 16, 16)
    assert geo.shape == (2, 5, 16, 16)
    assert score.dtype == jnp.float32 and geo.dtype == jnp.float32
    assert jnp.allclose(score, ref_score, atol=2e-3, rtol=1e-3)
    assert jnp.allclose(geo, ref_geo, atol=5e-2, rtol=1e-3)

    print("KERNEL_OK")
</pallas_src>

<mosaic_0001>
module attributes {stable_mosaic.version = 11 : i64} {
  func.func @_output_head_kernel(%arg0: i32, %arg1: i32, %arg2: memref<1x32x256xbf16, #tpu.memory_space<vmem>>, %arg3: memref<6x32xbf16, #tpu.memory_space<vmem>>, %arg4: memref<6x1xf32, #tpu.memory_space<vmem>>, %arg5: memref<1x1x256xf32, #tpu.memory_space<vmem>>, %arg6: memref<1x5x256xf32, #tpu.memory_space<vmem>>) attributes {dimension_semantics = [#tpu.dimension_semantics<parallel>, #tpu.dimension_semantics<parallel>], iteration_bounds = array<i64: 2, 1>, scalar_prefetch = 0 : i64, scratch_operands = 0 : i64, tpu.core_type = #tpu.core_type<tc>, window_params = [{transform_indices = @transform_0, window_bounds = array<i64: 1, 32, 256>}, {pipeline_mode = #tpu.pipeline_mode<synchronous>, transform_indices = @transform_1, window_bounds = array<i64: 6, 32>}, {pipeline_mode = #tpu.pipeline_mode<synchronous>, transform_indices = @transform_2, window_bounds = array<i64: 6, 1>}, {transform_indices = @transform_3, window_bounds = array<i64: 1, 1, 256>}, {transform_indices = @transform_4, window_bounds = array<i64: 1, 5, 256>}]} {
    %c0 = arith.constant 0 : index
    %c0_0 = arith.constant 0 : index
    %c0_1 = arith.constant 0 : index
    %0 = vector.load %arg2[%c0, %c0_0, %c0_1] : memref<1x32x256xbf16, #tpu.memory_space<vmem>>, vector<1x32x256xbf16>
    %1 = vector.shape_cast %0 : vector<1x32x256xbf16> to vector<32x256xbf16>
    %c0_2 = arith.constant 0 : index
    %c0_3 = arith.constant 0 : index
    %2 = vector.load %arg3[%c0_2, %c0_3] : memref<6x32xbf16, #tpu.memory_space<vmem>>, vector<6x32xbf16>
    %cst = arith.constant dense<0.000000e+00> : vector<6x256xf32>
    %3 = tpu.matmul %2, %1, %cst {dimension_numbers = #tpu.dot_dimension_numbers<[1], [0], [0], [1], [0, 0, 1, 1], [], []>} : vector<6x32xbf16>, vector<32x256xbf16>, vector<6x256xf32> -> vector<6x256xf32>
    %c0_4 = arith.constant 0 : index
    %c0_5 = arith.constant 0 : index
    %4 = vector.load %arg4[%c0_4, %c0_5] : memref<6x1xf32, #tpu.memory_space<vmem>>, vector<6x1xf32>
    %5 = vector.broadcast %4 : vector<6x1xf32> to vector<6x256xf32>
    %6 = arith.addf %3, %5 : vector<6x256xf32>
    %7 = arith.negf %6 : vector<6x256xf32>
    %8 = math.exp %7 : vector<6x256xf32>
    %cst_6 = arith.constant 1.000000e+00 : f32
    %9 = vector.broadcast %cst_6 : f32 to vector<6x256xf32>
    %10 = arith.addf %9, %8 : vector<6x256xf32>
    %11 = arith.divf %9, %10 : vector<6x256xf32>
    %12 = vector.extract_strided_slice %11 {offsets = [0, 0], sizes = [4, 256], strides = [1, 1]} : vector<6x256xf32> to vector<4x256xf32>
    %cst_7 = arith.constant 5.120000e+02 : f32
    %13 = vector.broadcast %cst_7 : f32 to vector<4x256xf32>
    %14 = arith.mulf %12, %13 : vector<4x256xf32>
    %c0_8 = arith.constant 0 : index
    %c0_9 = arith.constant 0 : index
    %c0_10 = arith.constant 0 : index
    %15 = vector.load %arg6[%c0_8, %c0_9, %c0_10] : memref<1x5x256xf32, #tpu.memory_space<vmem>>, vector<1x4x256xf32>
    %16 = vector.shape_cast %15 : vector<1x4x256xf32> to vector<4x256xf32>
    %17 = vector.shape_cast %14 : vector<4x256xf32> to vector<1x4x256xf32>
    tpu.vector_store %arg6[%c0_8, %c0_9, %c0_10], %17 {strides = array<i32>} : memref<1x5x256xf32, #tpu.memory_space<vmem>>, vector<1x4x256xf32>,
    %18 = vector.extract_strided_slice %11 {offsets = [4, 0], sizes = [1, 256], strides = [1, 1]} : vector<6x256xf32> to vector<1x256xf32>
    %cst_11 = arith.constant 5.000000e-01 : f32
    %19 = vector.broadcast %cst_11 : f32 to vector<1x256xf32>
    %20 = arith.subf %18, %19 : vector<1x256xf32>
    %cst_12 = arith.constant 3.14159274 : f32
    %21 = vector.broadcast %cst_12 : f32 to vector<1x256xf32>
    %22 = arith.mulf %20, %21 : vector<1x256xf32>
    %c0_13 = arith.constant 0 : index
    %c4 = arith.constant 4 : index
    %c0_14 = arith.constant 0 : index
    %23 = vector.load %arg6[%c0_13, %c4, %c0_14] : memref<1x5x256xf32, #tpu.memory_space<vmem>>, vector<1x1x256xf32>
    %24 = vector.shape_cast %23 : vector<1x1x256xf32> to vector<1x256xf32>
    %25 = vector.shape_cast %22 : vector<1x256xf32> to vector<1x1x256xf32>
    tpu.vector_store %arg6[%c0_13, %c4, %c0_14], %25 {strides = array<i32>} : memref<1x5x256xf32, #tpu.memory_space<vmem>>, vector<1x1x256xf32>,
    %26 = vector.extract_strided_slice %11 {offsets = [5, 0], sizes = [1, 256], strides = [1, 1]} : vector<6x256xf32> to vector<1x256xf32>
    %c0_15 = arith.constant 0 : index
    %c0_16 = arith.constant 0 : index
    %c0_17 = arith.constant 0 : index
    %27 = vector.load %arg5[%c0_15, %c0_16, %c0_17] : memref<1x1x256xf32, #tpu.memory_space<vmem>>, vector<1x1x256xf32>
    %28 = vector.shape_cast %27 : vector<1x1x256xf32> to vector<1x256xf32>
    %29 = vector.shape_cast %26 : vector<1x256xf32> to vector<1x1x256xf32>
    tpu.vector_store %arg5[%c0_15, %c0_16, %c0_17], %29 {strides = array<i32>} : memref<1x1x256xf32, #tpu.memory_space<vmem>>, vector<1x1x256xf32>,
    return
  }
  func.func @transform_0(%arg0: i32, %arg1: i32) -> (i32, i32, i32) {
    %c0_i32 = arith.constant 0 : i32
    %c0_i32_0 = arith.constant 0 : i32
    return %arg0, %c0_i32, %arg1 : i32, i32, i32
  }
  func.func @transform_1(%arg0: i32, %arg1: i32) -> (i32, i32) {
    %c0_i32 = arith.constant 0 : i32
    %c0_i32_0 = arith.constant 0 : i32
    %c0_i32_1 = arith.constant 0 : i32
    return %c0_i32, %c0_i32_0 : i32, i32
  }
  func.func @transform_2(%arg0: i32, %arg1: i32) -> (i32, i32) {
    %c0_i32 = arith.constant 0 : i32
    %c0_i32_0 = arith.constant 0 : i32
    %c0_i32_1 = arith.constant 0 : i32
    return %c0_i32, %c0_i32_0 : i32, i32
  }
  func.func @transform_3(%arg0: i32, %arg1: i32) -> (i32, i32, i32) {
    %c0_i32 = arith.constant 0 : i32
    %c0_i32_0 = arith.constant 0 : i32
    return %arg0, %c0_i32, %arg1 : i32, i32, i32
  }
  func.func @transform_4(%arg0: i32, %arg1: i32) -> (i32, i32, i32) {
    %c0_i32 = arith.constant 0 : i32
    %c0_i32_0 = arith.constant 0 : i32
    return %arg0, %c0_i32, %arg1 : i32, i32, i32
  }
}

</mosaic_0001>

<bundles_post_ra>
// kernel: tpu_custom_call.1
= control target key start
LH: loop header
LB: loop body
LE: loop exit
PB: predicated region body
PF: predicated region fallthrough
CT: control target
= control target key end

     0   :  { %10 = vsyncpa [#allocation3], 0  ;;  %s936_s0 = inlined_call_operand.hbm [shape: bf16[2,32,256], index: 0, kind: input, shape index: {}]   ;;  %s937_s1 = inlined_call_operand.vmem [shape: bf16[6,32], index: 1, kind: input, shape index: {}]   ;;  %s938_s2 = inlined_call_operand.vmem [shape: f32[6,1], index: 2, kind: input, shape index: {}]   ;;  %s939_s3 = inlined_call_operand.hbm [shape: f32[2,1,256], index: 3, kind: output, shape index: {0}]   ;;  %s940_s4 = inlined_call_operand.vmem [shape: f32[2,5,256], index: 4, kind: output, shape index: {1}]  }
   0x1   :  { %12 = vsyncpa [#allocation3 + $0x1], 0 }
   0x2   :  { %13 = vsyncpa [#allocation4], 0 }
   0x3   :  { %15 = vsyncpa [#allocation4 + $0x1], 0  ;;  %s804_s15 = smov 0   ;;  %s806_s16 = smov 0  }
   0x4   :  { %s808_s17 = smov 0   ;;  %s810_s18 = smov 0  }
   0x5   :  { %s812_s19 = smov 0   ;;  %s814_s20 = smov 0  }
   0x6 LB: > { %s543_s21 = sadd.s32 4294967295, %s774_s20   ;;  %s544_s22 = sadd.s32 4294967294, %s774_s20   ;;  %s774_s20 = sphi %s814_s20, %s21_s20   ;;  %s770_s19 = sphi %s812_s19, %s949_s19   ;;  %s766_s18 = sphi %s810_s18, %s948_s18   ;;  %s762_s17 = sphi %s808_s17, %s947_s17   ;;  %s758_s16 = sphi %s806_s16, %s946_s16   ;;  %s754_s15 = sphi %s804_s15, %s945_s15  }
   0x7   : > { %s33_s23 = sadd.s32 1, %s770_s19  ;;  %s42_s24 = sadd.s32 1, %s762_s17 }
   0x8   : > { %p35_p0 = scmp.ge.s32.totalorder %s33_s23, 2  ;;  %p49_p1 = scmp.ne.s32.totalorder %s762_s17, %s758_s16 }
   0x9   : > { %p50_p2 = scmp.eq.s32.totalorder %s774_s20, 0  ;;  %p55_p3 = scmp.ne.s32.totalorder %s758_s16, %s754_s15 }
   0xa   : > { %s951_s23 = smov (%p35_p0, %s33_s23), 0  ;;  %p56_p5 = scmp.eq.s32.totalorder %s543_s21, 0 }
   0xb   : > { %p845_p4 = por %p50_p2, %p49_p1  ;;  %s37_s26 = ssub.s32 %s770_s19, %s951_s23 }
   0xc   : > { %p123_p6 = scmp.eq.s32.totalorder %s543_s21, 1  ;;  %p40_p7 = scmp.eq.s32.totalorder %s37_s26, 0 }
   0xd   : > { %p851_p8 = por %p56_p5, %p55_p3  ;;  %p129_p10 = scmp.eq.s32.totalorder %s544_s22, 1 }
   0xe   : > { %p855_p9 = por %p123_p6, %p49_p1  ;;  %p546_p12 = scmp.ge.s32.totalorder %s774_s20, 2 }
   0xf   : > { %s860_s29 = scalar_select %p40_p7, %s762_s17, %s42_s24  }
  0x10   : > { %p862_p11 = por %p129_p10, %p55_p3  ;;  %p600_p13 = scmp.lt.s32.totalorder %s774_s20, 2 }
  0x11   : > { %s183_s5 = sand.u32 1, %s762_s17   ;;  %s582_s7 = sshll.u32 %s770_s19, 5 }
  0x12   : > { %s547_s6 = sshll.u32 %s183_s5, 5  ;;  %s194_s10 = scalar_lea.hbm %s936_s0, %s582_s7 }
  0x13   : > { %s187_s11 = scalar_lea.vmem [#allocation2], %s547_s6  ;;  %s195_s13 = sshll.u32 %s194_s10, 4  ;;  %s196_s13 = int_to_ptr.hbm [resolvable:$true] %s195_s13 }
  0x14   : > { %s197_s12 = sshll.u32 %s187_s11, 4  ;;  %p593_p0 = pnand %p600_p13, %p845_p4  ;;  %s198_s12 = int_to_ptr.vmem [resolvable:$true] %s197_s12 }
  0x15   : > { %p550_p1 = scmp.ge.s32.totalorder %s774_s20, 1  ;;  %s184_s14 = scalar_lea.sflag [#allocation3], %s183_s5 }
  0x16   : > { %s776_s21 = smov 128   ;;  %s777_s22 = smov 8  }
  0x17   : > { %595 = dma.hbm_to_vmem [thread:$0]  (!%p593_p0), %s196_s13, 512, %s198_s12, %s184_s14, %s776_s21, %s776_s21, %s777_s22  }
  0x18   : > { %p205_p2 = scmp.lt.s32.totalorder %s774_s20, 3 }
  0x1a   : > { %p206_p3 = pnand %p550_p1, %p205_p2 }
  0x1b   : > { %s878_s24 = sand.u32 (!%p206_p3), 1, %s758_s16  }
  0x1c   : > { %209 = sbr.rel (%p206_p3) target bundleno = 226 (0xe2), region = 32  ;;  %s551_s26 = sshll.u32 (!%p206_p3), %s878_s24, 5 }
  0x1d   : > { %s212_s6 = scalar_lea.sflag (!%p206_p3), [#allocation3], %s878_s24  ;;  %s215_s7 = scalar_lea.vmem (!%p206_p3), [#allocation2], %s551_s26 }
  0x21   : > { %745 = dma.done.wait (%p851_p8), %s212_s6, 512  }
  0x22   : > { %747 = vsyncadd (%p851_p8), %s212_s6, 4294966784  ;;  %v778_v0 = vmov 0   ;;  %v565_v1 = vld [vmem:[%s215_s7 + $0x10] sm:$0xf]  ;;  %v587_v2 = vld [vmem:[%s215_s7 + $0x14] sm:$0xf0]  ;;  %v377_v54 = vlaneseq }
  0x23   : > { %653 = vset.pattern.permute.xlu0 %v778_v0  ;;  %v586_v3 = vld [vmem:[%s215_s7 + $0x14] sm:$0xf]  ;;  %v566_v4 = vor.u32 %v587_v2, %v565_v1  ;;  %v567_v5 = vld [vmem:[%s215_s7 + $0x18] sm:$0xf0]  ;;  %v557_v6 = vld [vmem:[%s215_s7] sm:$0xf] }
  0x24   : > { %v585_v7 = vld [vmem:[%s215_s7 + $0x4] sm:$0xf0]  ;;  %v570_v8 = vor.u32 %v586_v3, %v567_v5  ;;  %v584_v9 = vld [vmem:[%s215_s7 + $0x4] sm:$0xf]  ;;  %v559_v10 = vld [vmem:[%s215_s7 + $0x8] sm:$0xf0] }
  0x25   : > { %304 = vmatpush.bf16.msra.mxu0 %v566_v4  ;;  %v558_v11 = vor.u32 %v585_v7, %v557_v6  ;;  %v268_v12 = vld [vmem:[%s938_s2] sm:$0x3f]  ;;  %v562_v13 = vor.u32 %v584_v9, %v559_v10  ;;  %vm294_vm0 = vcmask 261120   ;;  %p253_p4 = scmp.lt.s32.totalorder %s766_s18, 1  ;;  %vm379_vm9 = vcmp.lt.s32.totalorder %v377_v54, 256  ;;  %s552_s14 = sshll.u32 %s878_s24, 1 }
  0x26   : > { %317 = vmatpush.bf16.msra.mxu1 %v570_v8  ;;  %271 = vperm.xlu0 %653, %v268_v12   ;;  %v267_v14 = vld [vmem:[%s937_s1] sm:$0x7]  ;;  %s579_s21 = sshll.u32 %s766_s18, 1  ;;  %s238_s7 = scalar_lea.vmem [#allocation5], %s552_s14 }
  0x27   : > { %s254_s9 = scalar_select %p253_p4, %s766_s18, 1 }
  0x28   : > { %s414_s6 = scalar_lea.hbm %s939_s3, %s579_s21  ;;  %s416_s25 = sshll.u32 %s238_s7, 4  ;;  %s417_s25 = int_to_ptr.vmem [resolvable:$true] %s416_s25 }
  0x29   : > { %305 = vmatpush.bf16.msra.mxu0 %v558_v11  ;;  %s583_s10 = sshll.u32 %s254_s9, 4  ;;  %s418_s5 = sshll.u32 %s414_s6, 4  ;;  %s419_s5 = int_to_ptr.hbm [resolvable:$true] %s418_s5 }
  0x2a   : > { %318 = vmatpush.bf16.msra.mxu1 %v562_v13  ;;  %s260_s13 = scalar_lea.vmem %s940_s4, %s583_s10  ;;  %s393_s27 = scalar_lea.sflag [#allocation4], %s878_s24 }
  0x2b   : > { %s706_s8 = sshra.s32 %s419_s5, 4  ;;  %s712_s11 = scalar_lea.hbm %s939_s3, 4  ;;  %s707_s8 = int_to_ptr.hbm [resolvable:$true] %s706_s8 }
  0x2c   : > { %571 = vmatmul.msk.bf16.vlgmr.msra.gmra.mxu0 %vm294_vm0, %v267_v14  ;;  %s708_s9 = scalar_lea.hbm %s707_s8, 2  ;;  %p713_p8 = scmp.lt.s32.totalorder %s707_s8, %s939_s3 }
  0x2d   : > { %572 = vmatmul.msk.bf16.vlgmr.msra.gmra.mxu1 %vm294_vm0, %v267_v14  ;;  %p709_p5 = scmp.ne.s32.totalorder %s707_s8, %s708_s9  ;;  %p714_p10 = scmp.lt.s32.totalorder %s712_s11, %s708_s9 }
  0x2f   : > { %p710_p6 = pnand %p709_p5, %p855_p9  ;;  %p715_p13 = por %p714_p10, %p713_p8 }
  0x31   : > { %p711_p7 = pneg %p710_p6 }
  0x33   : > { %p716_p0 = pnand %p715_p13, %p711_p7 }
  0x98   : > { %v272_v15 = vpop.permute.xlu0 %271 }
  0xa9   : > { %v307_v16 = vpop.f32.mrf.mxu0 }
  0xaa   : > { %v308_v17 = vadd.f32 %v307_v16, %v272_v15  ;;  %v320_v18 = vpop.f32.mrf.mxu1 }
  0xab   : > { %v321_v19 = vadd.f32 %v320_v18, %v272_v15 }
  0xac   : > { %v573_v20 = vmul.f32 -1.442695, %v308_v17 }
  0xad   : > { %v574_v21 = vmul.f32 -1.442695, %v321_v19 }
  0xae   : > { %654 = vpow2.f32 %v573_v20 }
  0xaf   : > { %656 = vpow2.f32 %v574_v21 }
  0xb1   : > { %v309_v22 = vpop.f32.mrf.mxu0 }
  0xb2   : > { %v322_v23 = vpop.f32.mrf.mxu1 }
  0xb4   : > { %v655_v24 = vpop.eup %654 }
  0xb5   : > { %v657_v25 = vpop.eup %656  ;;  %v330_v26 = vadd.f32 1.0, %v655_v24 }
  0xb6   : > { %v331_v27 = vadd.f32 1.0, %v657_v25 }
  0xb7   : > { %658 = vrcp.f32 %v330_v26  ;;  %v343_v33 = vand.u32 2147483648, %v330_v26  ;;  %v341_v36 = vand.u32 2147483647, %v330_v26  ;;  %vm337_vm3 = vweird.f32 %v330_v26 }
  0xb8   : > { %660 = vrcp.f32 %v331_v27  ;;  %v358_v37 = vand.u32 2147483648, %v331_v27  ;;  %v356_v39 = vand.u32 2147483647, %v331_v27  ;;  %vm352_vm5 = vweird.f32 %v331_v27 }
  0xb9   : > { %v344_v41 = vor.u32 1.1754944e-38, %v343_v33  ;;  %vm342_vm6 = vcmp.eq.f32.partialorder %v341_v36, 8.507059e+37 }
  0xba   : > { %v359_v44 = vor.u32 1.1754944e-38, %v358_v37  ;;  %vm357_vm8 = vcmp.eq.f32.partialorder %v356_v39, 8.507059e+37 }
  0xbd   : > { %v659_v28 = vpop.eup %658 }
  0xbe   : > { %v661_v29 = vpop.eup %660  ;;  %v333_v30 = vmul.f32 %v659_v28, %v330_v26  ;;  %vm338_vm1 = vweird.f32 %v659_v28 }
  0xbf   : > { %v348_v31 = vmul.f32 %v661_v29, %v331_v27  ;;  %vm353_vm2 = vweird.f32 %v661_v29  ;;  %vm339_vm4 = vmor %vm337_vm3, %vm338_vm1 }
  0xc0   : > { %v334_v32 = vsub.f32 1.0, %v333_v30  ;;  %vm354_vm7 = vmor %vm352_vm5, %vm353_vm2 }
  0xc1   : > { %v349_v34 = vsub.f32 1.0, %v348_v31 }
  0xc2   : > { %v335_v35 = vmul.f32 %v659_v28, %v334_v32 }
  0xc3   : > { %v350_v38 = vmul.f32 %v661_v29, %v349_v34 }
  0xc4   : > { %v336_v40 = vadd.f32 %v659_v28, %v335_v35 }
  0xc5   : > { %v351_v42 = vadd.f32 %v661_v29, %v350_v38 }
  0xc6   : > { %v340_v43 = vsel %vm339_vm4, %v659_v28, %v336_v40 }
  0xc7   : > { %v345_v45 = vsel %vm342_vm6, %v344_v41, %v340_v43  ;;  %v355_v46 = vsel %vm354_vm7, %v661_v29, %v351_v42 }
  0xc8   : > { %v362_v47 = vmul.f32 512.0, %v345_v45  ;;  %v575_v48 = vadd.f32 -0.5, %v345_v45  ;;  %v360_v49 = vsel %vm357_vm8, %v359_v44, %v355_v46 }
  0xc9   : > { %v363_v50 = vmul.f32 512.0, %v360_v49  ;;  %v576_v51 = vadd.f32 -0.5, %v360_v49 }
  0xca   : > { %v368_v52 = vmul.f32 3.1415927, %v575_v48  ;;  %364 = vst [vmem:[%s260_s13] sm:$0xf] %v362_v47 }
  0xcb   : > { %v369_v53 = vmul.f32 3.1415927, %v576_v51  ;;  %365 = vst [vmem:[%s260_s13 + $0x8] sm:$0xf] %v363_v50 }
  0xcc   : > { %372 = vst [vmem:[#allocation1] sm:$0xff] %v368_v52 }
  0xcd   : > { %373 = vst [vmem:[#allocation1 + $0x9] sm:$0xff] %v369_v53 }
  0xd4   : > { %v375_v55 = vld [vmem:[#allocation1 + $0x4] ss:$9 sm:$0xff] }
  0xd5   : > { %577 = vst.msk [vmem:[%s260_s13 + $0x4] ss:$8 sm:$0x3] %vm379_vm9, %v375_v55 }
  0xd6   : > { %386 = vst [vmem:[#allocation1] sm:$0xff] %v345_v45 }
  0xd7   : > { %387 = vst [vmem:[#allocation1 + $0x9] sm:$0xff] %v360_v49 }
  0xde   : > { %v389_v56 = vld [vmem:[#allocation1 + $0x5] ss:$9 sm:$0xff] }
  0xdf   : > { %391 = vst.msk [vmem:[%s238_s7] sm:$0x3] %vm379_vm9, %v389_v56 }
  0xe0   : > { %719 = shalt.err (!%p716_p0)
}
  0xe1   : > { %590 = dma.vmem_to_hbm [thread:$0]  (%p855_p9), %s417_s25, 32, %s419_s5, %s393_s27  }
  0xe2 PF: > { %s434_s24 = sand.u32 1, %s754_s15   ;;  %p597_p1 = pnand %p546_p12, %p862_p11 }
  0xe3   : > { %s435_s14 = scalar_lea.sflag [#allocation4], %s434_s24 }
  0xe4   : > { %p598_p2 = pneg %p597_p1 }
  0xe6   : > { %749 = dma.done.wait (%p598_p2), %s435_s14, 32  }
  0xe7   : > { %751 = vsyncadd (%p598_p2), %s435_s14, 4294967264  ;;  %s21_s20 = sadd.s32 1, %s774_s20   ;;  %s945_s15 = smov %s758_s16 }
  0xe8   : > { %p18_p3 = scmp.ge.s32.totalorder %s21_s20, 4   ;;  %s946_s16 = smov %s762_s17 }
  0xe9   : > { %s947_s17 = smov %s860_s29  ;;  %s948_s18 = smov %s770_s19 }
  0xea   : > { %s949_s19 = smov %s951_s23  ;;  %20 = sbr.rel (!%p18_p3) target bundleno = 6 (0x6), region = 92 }
  0xef   :  { %453 = vsyncpa [#allocation3], 1 }
  0xf0   :  { %455 = vsyncpa [#allocation3 + $0x1], 1 }
  0xf1   :  { %456 = vsyncpa [#allocation4], 1 }
  0xf2   :  { %458 = vsyncpa [#allocation4 + $0x1], 1 }

</bundles_post_ra>
